<compile_context>
chip_gen: v7x
topology: tpu7x:2x2x1
jax: 0.10.0
libtpu: 0.0.40
codegen_flags: <defaults>
</compile_context>

<pallas_src>
import jax
import jax.numpy as jnp
import numpy as np
from jax import lax
from jax.experimental import pallas as pl
from jax.experimental.pallas import tpu as pltpu

LANE = 128
SUBLANE = 8


def _round_up(n, m):
    return ((n + m - 1) // m) * m


def _sigmoid(x):
    # Full-precision sigmoid via a single EUP transcendental (tanh) instead of
    # an exp + VPU divide: sigmoid(x) = 0.5 * tanh(0.5 * x) + 0.5
    return 0.5 * jnp.tanh(0.5 * x) + 0.5


# ---------------------------------------------------------------------------
# Kernel A: conv frontend + LSTM input projection (all MXU matmuls)
# ---------------------------------------------------------------------------
def frontend_kernel(x_ref, w1m_ref, b1r_ref, w2m_ref, b2_ref, wih_ref, bih_ref,
                    gx_ref):
    x = x_ref[...]                                                 # (tile_n, D)
    y = jnp.maximum(
        jnp.dot(x, w1m_ref[...], preferred_element_type=jnp.float32)
        + b1r_ref[...], 0.0)                                       # conv1 + ReLU
    # TODO(synk): nn.Dropout() is stochastic in training; modeled as eval-mode identity.
    z = jnp.maximum(
        jnp.dot(y, w2m_ref[...], preferred_element_type=jnp.float32)
        + b2_ref[...], 0.0)                                        # conv2 + ReLU
    gx_ref[...] = (jnp.dot(z, wih_ref[...], preferred_element_type=jnp.float32)
                   + bih_ref[...])                                 # x @ [Wih_f|Wih_b] + b


def frontend_proj(x2d, pk):
    n, d = x2d.shape
    g = pk["wih_p"].shape[1]
    # Multiple-of-8 tiles, capped at 256 rows; pad rows instead of requiring
    # exact divisibility (avoids unbounded or 8-row tiles).
    n8 = _round_up(n, SUBLANE)
    tile_n = min(256, n8)
    n_pad = _round_up(n8, tile_n)
    if n_pad != n:
        x2d = jnp.pad(x2d, ((0, n_pad - n), (0, 0)))

    def full(a):
        return pl.BlockSpec(a.shape, lambda i: (0,) * a.ndim)

    gx = pl.pallas_call(
        frontend_kernel,
        out_shape=jax.ShapeDtypeStruct((n_pad, g), jnp.float32),
        grid=(n_pad // tile_n,),
        in_specs=[
            pl.BlockSpec((tile_n, d), lambda i: (i, 0)),
            full(pk["w1_mat"]), full(pk["b1_rep"]), full(pk["w2_mat"]),
            full(pk["b2_s"]), full(pk["wih_p"]), full(pk["b_p"]),
        ],
        out_specs=pl.BlockSpec((tile_n, g), lambda i: (i, 0)),
        compiler_params=pltpu.CompilerParams(
            dimension_semantics=("parallel",)),
    )(x2d, pk["w1_mat"], pk["b1_rep"], pk["w2_mat"], pk["b2_s"],
      pk["wih_p"], pk["b_p"])
    return gx[:n]


# ---------------------------------------------------------------------------
# Kernel B: bidirectional LSTM recurrence + batched decoder + log_softmax
# ---------------------------------------------------------------------------
def recurrence_kernel(lens_ref, gx_ref, whh_ref, dwf_ref, dwb_ref, db_ref,
                      out_ref, out_f, out_b, h_scr, c_scr):
    t_total, b_t, g = gx_ref.shape
    h_dim = g // 8
    h2 = 2 * h_dim
    a_pad = out_ref.shape[-1]

    h_scr[...] = jnp.zeros_like(h_scr)
    c_scr[...] = jnp.zeros_like(c_scr)

    # Hoisted loop invariants (weights, lane masks, broadcast lengths).
    whh = whh_ref[...]                                   # (2H, 8H) block-diag
    lens = lens_ref[...]                                 # (Bt, 1) int32
    lens2h = jnp.broadcast_to(lens, (b_t, h2))           # (Bt, 2H)
    col_2h = lax.broadcasted_iota(jnp.int32, (b_t, h2), 1)
    fwd_cols_2h = col_2h < h_dim                         # fwd state columns
    unroll = t_total if t_total <= 32 else 8             # partial unroll

    def step(i, carry):
        t = i
        tr = t_total - 1 - i
        h = h_scr[...]
        c = c_scr[...]
        # gx merge (fwd cols from t, bwd cols from T-1-t) is precomputed in the
        # wrapper, so the serial loop does a single load here.
        gates = gx_ref[t] + jnp.dot(h, whh, preferred_element_type=jnp.float32)
        i_g = _sigmoid(gates[:, 0:h2])
        f_g = _sigmoid(gates[:, h2:2 * h2])
        g_g = jnp.tanh(gates[:, 2 * h2:3 * h2])
        o_g = _sigmoid(gates[:, 3 * h2:4 * h2])
        c_new = f_g * c + i_g * g_g
        h_new = o_g * jnp.tanh(c_new)
        # packed-sequence masking: freeze state / zero output when index >= len
        tsel = jnp.where(fwd_cols_2h, t, tr)             # (Bt, 2H) int32
        mask = tsel < lens2h
        h_scr[...] = jnp.where(mask, h_new, h)
        c_scr[...] = jnp.where(mask, c_new, c)
        out_f[t] = jnp.where(t < lens, h_new[:, :h_dim], 0.0)
        out_b[tr] = jnp.where(tr < lens, h_new[:, h_dim:], 0.0)
        return carry

    lax.fori_loop(0, t_total, step, 0, unroll=unroll)

    # Batched decoder (one matmul per direction over all T*Bt rows) +
    # vectorized log_softmax; output lane-padded to 128 (pad bias = -1e30 so it
    # vanishes in the logsumexp), sliced back to alphabet outside the kernel.
    hf = out_f[...].reshape(t_total * b_t, h_dim)
    hb = out_b[...].reshape(t_total * b_t, h_dim)
    logits = (jnp.dot(hf, dwf_ref[...], preferred_element_type=jnp.float32)
              + jnp.dot(hb, dwb_ref[...], preferred_element_type=jnp.float32)
              + db_ref[...])
    m = jnp.max(logits, axis=-1, keepdims=True)
    shifted = logits - m
    lse = jnp.log(jnp.sum(jnp.exp(shifted), axis=-1, keepdims=True))
    out_ref[...] = (shifted - lse).reshape(t_total, b_t, a_pad)


def recurrence_decode(gx_tbg, lens2d, pk):
    t_total, b_pad, g = gx_tbg.shape
    h_dim = g // 8
    a_pad = pk["dec_wf"].shape[1]
    b_t = SUBLANE
    n_bt = b_pad // b_t

    def full(a):
        return pl.BlockSpec(a.shape, lambda i: (0,) * a.ndim)

    lane_pad = lambda x: _round_up(x, LANE)
    vmem_est = 4 * (2 * t_total * b_t * lane_pad(g)            # gx blocks (x2)
                    + 2 * t_total * b_t * lane_pad(a_pad)      # out blocks (x2)
                    + 2 * t_total * b_t * lane_pad(h_dim)      # out_f/out_b
                    + 4 * b_t * lane_pad(2 * h_dim)            # h/c state
                    + (4 * h_dim + 2) * lane_pad(a_pad))       # weights
    vmem_limit = int(min(100 * 2**20, max(32 * 2**20, 2 * vmem_est)))

    return pl.pallas_call(
        recurrence_kernel,
        out_shape=jax.ShapeDtypeStruct((t_total, b_pad, a_pad), jnp.float32),
        grid=(n_bt,),
        in_specs=[
            pl.BlockSpec((b_t, 1), lambda i: (i, 0)),
            pl.BlockSpec((t_total, b_t, g), lambda i: (0, i, 0)),
            full(pk["whh_blk"]), full(pk["dec_wf"]), full(pk["dec_wb"]),
            full(pk["dec_b"]),
        ],
        out_specs=pl.BlockSpec((t_total, b_t, a_pad), lambda i: (0, i, 0)),
        scratch_shapes=[
            pltpu.VMEM((t_total, b_t, h_dim), jnp.float32),   # forward outputs
            pltpu.VMEM((t_total, b_t, h_dim), jnp.float32),   # backward outputs
            pltpu.VMEM((b_t, 2 * h_dim), jnp.float32),        # packed h state
            pltpu.VMEM((b_t, 2 * h_dim), jnp.float32),        # packed c state
        ],
        compiler_params=pltpu.CompilerParams(
            dimension_semantics=("parallel",),
            vmem_limit_bytes=vmem_limit),
    )(lens2d, gx_tbg, pk["whh_blk"], pk["dec_wf"], pk["dec_wb"], pk["dec_b"])


# ---------------------------------------------------------------------------
# Parameter packing (done once at the JAX level, outside the kernels)
# ---------------------------------------------------------------------------
def _pack_params(params):
    h = params["whh_f"].shape[0]
    d = params["wih_f"].shape[0]
    w1, b1 = params["conv1_w"], params["conv1_b"]
    w2, b2 = params["conv2_w"], params["conv2_b"]
    eye = jnp.eye(d, dtype=jnp.float32)
    sup = jnp.eye(d, k=1, dtype=jnp.float32)    # x @ sup -> x[:, d-1] (zero at d=0)
    sub = jnp.eye(d, k=-1, dtype=jnp.float32)   # x @ sub -> x[:, d+1] (zero at d=D-1)
    # conv1 as (D, 10D) banded matmul, conv2 as (10D, D) banded matmul
    w1_mat = jnp.concatenate(
        [w1[c, 0] * sup + w1[c, 1] * eye + w1[c, 2] * sub for c in range(10)],
        axis=1)
    b1_rep = jnp.repeat(b1, d)[None, :]
    w2_mat = jnp.concatenate(
        [w2[c, 0] * sup + w2[c, 1] * eye + w2[c, 2] * sub for c in range(10)],
        axis=0)
    b2_s = b2.reshape(1, 1)

    def interleave(wf, wb):   # gate-major, direction-interleaved columns
        blocks = []
        for k in range(4):
            blocks.append(wf[:, k * h:(k + 1) * h])
            blocks.append(wb[:, k * h:(k + 1) * h])
        return jnp.concatenate(blocks, axis=1)

    wih_p = interleave(params["wih_f"], params["wih_b"])     # (D, 8H) lane-dense
    b_p = interleave(params["b_f"], params["b_b"])           # (1, 8H)
    whh_blk = jnp.zeros((2 * h, 8 * h), jnp.float32)         # block-diag W_hh
    for k in range(4):
        whh_blk = whh_blk.at[:h, (2 * k) * h:(2 * k + 1) * h].set(
            params["whh_f"][:, k * h:(k + 1) * h])
        whh_blk = whh_blk.at[h:, (2 * k + 1) * h:(2 * k + 2) * h].set(
            params["whh_b"][:, k * h:(k + 1) * h])

    # Decoder: lane-pad alphabet to 128 (zero weights, -1e30 pad bias so the
    # padded columns vanish from the log_softmax normalization).
    a = params["dec_w"].shape[1]
    a_pad = _round_up(a, LANE)
    dec_w = jnp.pad(params["dec_w"], ((0, 0), (0, a_pad - a)))
    dec_b = jnp.pad(params["dec_b"], ((0, 0), (0, a_pad - a)),
                    constant_values=-1e30)

    return dict(w1_mat=w1_mat, b1_rep=b1_rep, w2_mat=w2_mat, b2_s=b2_s,
                wih_p=wih_p, b_p=b_p, whh_blk=whh_blk,
                dec_wf=dec_w[:h], dec_wb=dec_w[h:], dec_b=dec_b)


# ---------------------------------------------------------------------------
# Full forward
# ---------------------------------------------------------------------------
def lstm_asr_mfcc_forward(params, x, x_lens):
    b_sz, t_total, d = x.shape
    h_dim = params["whh_f"].shape[0]
    g = 8 * h_dim
    a = params["dec_w"].shape[1]
    pk = _pack_params(params)

    # Pad batch to a full sublane group (8); padded rows get len=0 so they are
    # frozen/zeroed by the in-kernel masking and sliced off at the end.
    b_pad = _round_up(b_sz, SUBLANE)
    lens = x_lens.astype(jnp.int32)
    if b_pad != b_sz:
        x = jnp.pad(x, ((0, b_pad - b_sz), (0, 0), (0, 0)))
        lens = jnp.pad(lens, (0, b_pad - b_sz))

    x_tm = jnp.transpose(x, (1, 0, 2)).reshape(t_total * b_pad, d)  # time-major rows
    gx = frontend_proj(x_tm, pk).reshape(t_total, b_pad, g)         # (T, Bp, 8H)

    # Hoist the fwd/bwd gate-column merge OUT of the serial recurrence:
    # forward gate columns read time t, backward gate columns read time T-1-t.
    col = jnp.arange(g)
    fwd_cols = (((col // h_dim) % 2) == 0)[None, None, :]
    gx_m = jnp.where(fwd_cols, gx, gx[::-1])

    lens2d = lens.reshape(b_pad, 1)
    logp = recurrence_decode(gx_m, lens2d, pk)                       # (T, Bp, 128)
    return jnp.transpose(logp[:, :b_sz, :a], (1, 0, 2))             # (B, T, A)


# ---------------------------------------------------------------------------
# Pure-JAX reference (for correctness check)
# ---------------------------------------------------------------------------
def ref_forward(params, x, x_lens):
    B, T, D = x.shape
    H = params["whh_f"].shape[0]
    xf = x.reshape(B * T, D)
    xp = jnp.pad(xf, ((0, 0), (1, 1)))
    w1, b1 = params["conv1_w"], params["conv1_b"]
    y = jnp.stack([w1[c, 0] * xp[:, :D] + w1[c, 1] * xp[:, 1:D + 1]
                   + w1[c, 2] * xp[:, 2:D + 2] + b1[c] for c in range(10)], 0)
    y = jnp.maximum(y, 0.0)
    yp = jnp.pad(y, ((0, 0), (0, 0), (1, 1)))
    w2, b2 = params["conv2_w"], params["conv2_b"]
    z = sum(w2[c, 0] * yp[c, :, :D] + w2[c, 1] * yp[c, :, 1:D + 1]
            + w2[c, 2] * yp[c, :, 2:D + 2] for c in range(10)) + b2[0]
    z = jnp.maximum(z, 0.0).reshape(B, T, D)

    def cell(x_t, h, c, wih_t, whh_t, b):
        g = x_t @ wih_t + h @ whh_t + b
        i = 1.0 / (1.0 + jnp.exp(-g[:, :H])); f = 1.0 / (1.0 + jnp.exp(-g[:, H:2 * H]))
        gg = jnp.tanh(g[:, 2 * H:3 * H]); o = 1.0 / (1.0 + jnp.exp(-g[:, 3 * H:4 * H]))
        c_new = f * c + i * gg
        return o * jnp.tanh(c_new), c_new

    lens = x_lens.astype(jnp.int32)
    out_f = jnp.zeros((B, T, H)); out_b = jnp.zeros((B, T, H))
    h = jnp.zeros((B, H)); c = jnp.zeros((B, H))
    for t in range(T):
        hn, cn = cell(z[:, t], h, c, params["wih_f"], params["whh_f"], params["b_f"])
        m = (t < lens).astype(jnp.float32)[:, None]
        h = m * hn + (1 - m) * h; c = m * cn + (1 - m) * c
        out_f = out_f.at[:, t].set(m * hn)
    h = jnp.zeros((B, H)); c = jnp.zeros((B, H))
    for t in range(T - 1, -1, -1):
        hn, cn = cell(z[:, t], h, c, params["wih_b"], params["whh_b"], params["b_b"])
        m = (t < lens).astype(jnp.float32)[:, None]
        h = m * hn + (1 - m) * h; c = m * cn + (1 - m) * c
        out_b = out_b.at[:, t].set(m * hn)
    lo = jnp.concatenate([out_f, out_b], axis=-1)
    logits = lo @ params["dec_w"] + params["dec_b"]
    return jax.nn.log_softmax(logits, axis=-1)


# ---------------------------------------------------------------------------
# Driver
# ---------------------------------------------------------------------------
if __name__ == "__main__":
    B, T = 2, 8
    MFCC_DIM, HIDDEN_DIM, ALPHABET = 16, 32, 28
    H = HIDDEN_DIM // 2

    key = jax.random.PRNGKey(0)
    ks = jax.random.split(key, 14)

    def init(k, shape, scale=0.1):
        return (scale * jax.random.normal(k, shape)).astype(jnp.float32)

    # Parameters (PyTorch shapes, stored pre-transposed where noted):
    #   conv1: w (10,1,3)->(10,3), b (10,);  conv2: w (1,10,3)->(10,3), b (1,)
    #   lstm (per direction): W_ih (4H,D)->store (D,4H), W_hh (4H,H)->(H,4H),
    #                         b = b_ih + b_hh -> (1,4H)   [gate order i,f,g,o]
    #   decoder: W (A,2H)->(2H,A), b (A,)->(1,A)
    params = dict(
        conv1_w=init(ks[0], (10, 3)), conv1_b=init(ks[1], (10,)),
        conv2_w=init(ks[2], (10, 3)), conv2_b=init(ks[3], (1,)),
        wih_f=init(ks[4], (MFCC_DIM, 4 * H)), whh_f=init(ks[5], (H, 4 * H)),
        b_f=init(ks[6], (1, 4 * H)),
        wih_b=init(ks[7], (MFCC_DIM, 4 * H)), whh_b=init(ks[8], (H, 4 * H)),
        b_b=init(ks[9], (1, 4 * H)),
        dec_w=init(ks[10], (2 * H, ALPHABET)), dec_b=init(ks[11], (1, ALPHABET)),
    )

    x = jax.random.normal(ks[12], (B, T, MFCC_DIM), dtype=jnp.float32)
    x_lens = jnp.array([T, 5], dtype=jnp.int32)   # max(x_lens) == T

    log_probs = jax.block_until_ready(lstm_asr_mfcc_forward(params, x, x_lens))
    ref = jax.block_until_ready(ref_forward(params, x, x_lens))

    assert log_probs.shape == (B, T, ALPHABET)
    assert bool(jnp.all(jnp.isfinite(log_probs)))
    np.testing.assert_allclose(np.asarray(log_probs), np.asarray(ref),
                               rtol=1e-3, atol=1e-3)
    print("KERNEL_OK")
</pallas_src>

<mosaic_0001>
module attributes {stable_mosaic.version = 11 : i64} {
  func.func @frontend_kernel(%arg0: i32, %arg1: memref<64x16xf32, #tpu.memory_space<vmem>>, %arg2: memref<16x160xf32, #tpu.memory_space<vmem>>, %arg3: memref<1x160xf32, #tpu.memory_space<vmem>>, %arg4: memref<160x16xf32, #tpu.memory_space<vmem>>, %arg5: memref<1x1xf32, #tpu.memory_space<vmem>>, %arg6: memref<16x128xf32, #tpu.memory_space<vmem>>, %arg7: memref<1x128xf32, #tpu.memory_space<vmem>>, %arg8: memref<64x128xf32, #tpu.memory_space<vmem>>) attributes {dimension_semantics = [#tpu.dimension_semantics<parallel>], iteration_bounds = array<i64: 1>, scalar_prefetch = 0 : i64, scratch_operands = 0 : i64, tpu.core_type = #tpu.core_type<tc>, window_params = [{transform_indices = @transform_0, window_bounds = array<i64: 64, 16>}, {pipeline_mode = #tpu.pipeline_mode<synchronous>, transform_indices = @transform_1, window_bounds = array<i64: 16, 160>}, {pipeline_mode = #tpu.pipeline_mode<synchronous>, transform_indices = @transform_2, window_bounds = array<i64: 1, 160>}, {pipeline_mode = #tpu.pipeline_mode<synchronous>, transform_indices = @transform_3, window_bounds = array<i64: 160, 16>}, {pipeline_mode = #tpu.pipeline_mode<synchronous>, transform_indices = @transform_4, window_bounds = array<i64: 1, 1>}, {pipeline_mode = #tpu.pipeline_mode<synchronous>, transform_indices = @transform_5, window_bounds = array<i64: 16, 128>}, {pipeline_mode = #tpu.pipeline_mode<synchronous>, transform_indices = @transform_6, window_bounds = array<i64: 1, 128>}, {transform_indices = @transform_7, window_bounds = array<i64: 64, 128>}]} {
    %c0 = arith.constant 0 : index
    %c0_0 = arith.constant 0 : index
    %0 = vector.load %arg1[%c0, %c0_0] : memref<64x16xf32, #tpu.memory_space<vmem>>, vector<64x16xf32>
    %c0_1 = arith.constant 0 : index
    %c0_2 = arith.constant 0 : index
    %1 = vector.load %arg2[%c0_1, %c0_2] : memref<16x160xf32, #tpu.memory_space<vmem>>, vector<16x160xf32>
    %cst = arith.constant dense<0.000000e+00> : vector<64x160xf32>
    %2 = tpu.matmul %0, %1, %cst {dimension_numbers = #tpu.dot_dimension_numbers<[1], [0], [0], [1], [0, 0, 1, 1], [], []>} : vector<64x16xf32>, vector<16x160xf32>, vector<64x160xf32> -> vector<64x160xf32>
    %c0_3 = arith.constant 0 : index
    %c0_4 = arith.constant 0 : index
    %3 = vector.load %arg3[%c0_3, %c0_4] : memref<1x160xf32, #tpu.memory_space<vmem>>, vector<1x160xf32>
    %4 = vector.broadcast %3 : vector<1x160xf32> to vector<64x160xf32>
    %5 = arith.addf %2, %4 : vector<64x160xf32>
    %cst_5 = arith.constant 0.000000e+00 : f32
    %6 = vector.broadcast %cst_5 : f32 to vector<64x160xf32>
    %7 = arith.maximumf %5, %6 : vector<64x160xf32>
    %c0_6 = arith.constant 0 : index
    %c0_7 = arith.constant 0 : index
    %8 = vector.load %arg4[%c0_6, %c0_7] : memref<160x16xf32, #tpu.memory_space<vmem>>, vector<160x16xf32>
    %cst_8 = arith.constant dense<0.000000e+00> : vector<64x16xf32>
    %9 = tpu.matmul %7, %8, %cst_8 {dimension_numbers = #tpu.dot_dimension_numbers<[1], [0], [0], [1], [0, 0, 1, 1], [], []>} : vector<64x160xf32>, vector<160x16xf32>, vector<64x16xf32> -> vector<64x16xf32>
    %c0_9 = arith.constant 0 : index
    %c0_10 = arith.constant 0 : index
    %10 = vector.load %arg5[%c0_9, %c0_10] : memref<1x1xf32, #tpu.memory_space<vmem>>, vector<1x1xf32>
    %11 = vector.broadcast %10 : vector<1x1xf32> to vector<64x16xf32>
    %12 = arith.addf %9, %11 : vector<64x16xf32>
    %cst_11 = arith.constant 0.000000e+00 : f32
    %13 = vector.broadcast %cst_11 : f32 to vector<64x16xf32>
    %14 = arith.maximumf %12, %13 : vector<64x16xf32>
    %c0_12 = arith.constant 0 : index
    %c0_13 = arith.constant 0 : index
    %15 = vector.load %arg6[%c0_12, %c0_13] : memref<16x128xf32, #tpu.memory_space<vmem>>, vector<16x128xf32>
    %cst_14 = arith.constant dense<0.000000e+00> : vector<64x128xf32>
    %16 = tpu.matmul %14, %15, %cst_14 {dimension_numbers = #tpu.dot_dimension_numbers<[1], [0], [0], [1], [0, 0, 1, 1], [], []>} : vector<64x16xf32>, vector<16x128xf32>, vector<64x128xf32> -> vector<64x128xf32>
    %c0_15 = arith.constant 0 : index
    %c0_16 = arith.constant 0 : index
    %17 = vector.load %arg7[%c0_15, %c0_16] : memref<1x128xf32, #tpu.memory_space<vmem>>, vector<1x128xf32>
    %18 = vector.broadcast %17 : vector<1x128xf32> to vector<64x128xf32>
    %19 = arith.addf %16, %18 : vector<64x128xf32>
    %c0_17 = arith.constant 0 : index
    %c0_18 = arith.constant 0 : index
    %20 = vector.load %arg8[%c0_17, %c0_18] : memref<64x128xf32, #tpu.memory_space<vmem>>, vector<64x128xf32>
    tpu.vector_store %arg8[%c0_17, %c0_18], %19 {strides = array<i32>} : memref<64x128xf32, #tpu.memory_space<vmem>>, vector<64x128xf32>,
    return
  }
  func.func @transform_0(%arg0: i32) -> (i32, i32) {
    %c0_i32 = arith.constant 0 : i32
    %c0_i32_0 = arith.constant 0 : i32
    return %arg0, %c0_i32 : i32, i32
  }
  func.func @transform_1(%arg0: i32) -> (i32, i32) {
    %c0_i32 = arith.constant 0 : i32
    %c0_i32_0 = arith.constant 0 : i32
    %c0_i32_1 = arith.constant 0 : i32
    return %c0_i32, %c0_i32_0 : i32, i32
  }
  func.func @transform_2(%arg0: i32) -> (i32, i32) {
    %c0_i32 = arith.constant 0 : i32
    %c0_i32_0 = arith.constant 0 : i32
    %c0_i32_1 = arith.constant 0 : i32
    return %c0_i32, %c0_i32_0 : i32, i32
  }
  func.func @transform_3(%arg0: i32) -> (i32, i32) {
    %c0_i32 = arith.constant 0 : i32
    %c0_i32_0 = arith.constant 0 : i32
    %c0_i32_1 = arith.constant 0 : i32
    return %c0_i32, %c0_i32_0 : i32, i32
  }
  func.func @transform_4(%arg0: i32) -> (i32, i32) {
    %c0_i32 = arith.constant 0 : i32
    %c0_i32_0 = arith.constant 0 : i32
    %c0_i32_1 = arith.constant 0 : i32
    return %c0_i32, %c0_i32_0 : i32, i32
  }
  func.func @transform_5(%arg0: i32) -> (i32, i32) {
    %c0_i32 = arith.constant 0 : i32
    %c0_i32_0 = arith.constant 0 : i32
    %c0_i32_1 = arith.constant 0 : i32
    return %c0_i32, %c0_i32_0 : i32, i32
  }
  func.func @transform_6(%arg0: i32) -> (i32, i32) {
    %c0_i32 = arith.constant 0 : i32
    %c0_i32_0 = arith.constant 0 : i32
    %c0_i32_1 = arith.constant 0 : i32
    return %c0_i32, %c0_i32_0 : i32, i32
  }
  func.func @transform_7(%arg0: i32) -> (i32, i32) {
    %c0_i32 = arith.constant 0 : i32
    %c0_i32_0 = arith.constant 0 : i32
    return %arg0, %c0_i32 : i32, i32
  }
}

</mosaic_0001>

<bundles_post_ra>
// kernel: tpu_custom_call.1
= control target key start
LH: loop header
LB: loop body
LE: loop exit
PB: predicated region body
PF: predicated region fallthrough
CT: control target
= control target key end

     0   :  { %s899_s0 = inlined_call_operand.vmem [shape: f32[64,16], index: 0, kind: input, shape index: {}]   ;;  %s900_s1 = inlined_call_operand.vmem [shape: f32[16,160], index: 1, kind: input, shape index: {}]   ;;  %s901_s2 = inlined_call_operand.vmem [shape: f32[1,160], index: 2, kind: input, shape index: {}]   ;;  %s902_s3 = inlined_call_operand.vmem [shape: f32[160,16], index: 3, kind: input, shape index: {}]   ;;  %s903_s4 = inlined_call_operand.<no memory space> [shape: f32[1,1], index: 4, kind: input, shape index: {}]   ;;  %s904_s5 = inlined_call_operand.vmem [shape: f32[16,128], index: 5, kind: input, shape index: {}]   ;;  %s905_s6 = inlined_call_operand.vmem [shape: f32[1,128], index: 6, kind: input, shape index: {}]   ;;  %s906_s7 = inlined_call_operand.hbm [shape: f32[64,128], index: 7, kind: output, shape index: {}]  }
   0x1   :  { %v12_v0 = vstv %s903_s4 }
   0x2   :  { %13 = vst [vmem:[#allocation2] sm:$0x1] %v12_v0 }
   0x3   :  { %v38_v1 = vld [vmem:[%s900_s1 + $0x8] sm:$0xff]  ;;  %v40_v2 = vld [vmem:[%s900_s1 + $0x18] sm:$0xff]  ;;  %v37_v3 = vld [vmem:[%s900_s1] sm:$0xff]  ;;  %v678_v6 = vmov 0.0   ;;  %v679_v7 = vmov 0.0|0.0   ;;  %vm53_vm0 = vcmask 130048  }
   0x4   :  { %v589_v4 = vpack.c.bf16 %v40_v2, %v38_v1  ;;  %v39_v5 = vld [vmem:[%s900_s1 + $0x10] sm:$0xff]  ;;  %142 = vmatprep.mubr.f32.mxu0 %v678_v6  ;;  %627 = vmatprep.subr.bf16.mxu1 %v679_v7  ;;  %v29_v9 = vld [vmem:[%s899_s0] sm:$0xff]  ;;  %v208_v11 = vld [vmem:[%s902_s3 + $0x8] sm:$0xff] }
   0x5   :  { %v591_v8 = vpack.c.bf16 %v39_v5, %v37_v3  ;;  %v207_v10 = vld [vmem:[%s902_s3] sm:$0xff]  ;;  %v209_v13 = vld [vmem:[%s902_s3 + $0x10] sm:$0xff]  ;;  %v210_v14 = vld [vmem:[%s902_s3 + $0x18] sm:$0xff] }
   0x6   :  { %590 = vmatprep.subr.bf16.mxu0 %v589_v4  ;;  %v594_v12 = vpack.c.bf16 %v208_v11, %v207_v10  ;;  %v30_v15 = vld [vmem:[%s899_s0 + $0x8] sm:$0xff]  ;;  %v597_v16 = vpack.c.bf16 %v210_v14, %v209_v13  ;;  %v211_v17 = vld [vmem:[%s902_s3 + $0x20] sm:$0xff] }
   0x7   :  { %592 = vmatpush1.bf16.msra.mxu0 %v591_v8  ;;  %v212_v18 = vld [vmem:[%s902_s3 + $0x28] sm:$0xff] }
   0x8   :  { %593 = vmatprep.subr.bf16.mxu0 %v679_v7  ;;  %637 = vmatpush1.bf16.msra.mxu1 %v594_v12 }
   0x9   :  { %628 = vmatprep.subr.bf16.mxu1 %v679_v7 }
   0xa   :  { %537 = vmatmul.mubr.msk.f32.vlgmr.msra.gmra.mrb[0].mxu0 %vm53_vm0, %v29_v9 }
   0xb   :  { %148 = vmatprep.mubr.f32.mxu0 %v678_v6  ;;  %595 = vmatpush1.bf16.msra.mxu0 %v594_v12 }
   0xc   :  { %596 = vmatprep.subr.bf16.mxu0 %v679_v7 }
   0xd   :  { %14 = vsyncpa [#allocation4], 0  ;;  %638 = vmatpush1.bf16.msra.mxu1 %v597_v16  ;;  %v31_v19 = vld [vmem:[%s899_s0 + $0x10] sm:$0xff]  ;;  %v600_v20 = vpack.c.bf16 %v212_v18, %v211_v17  ;;  %v214_v22 = vld [vmem:[%s902_s3 + $0x38] sm:$0xff]  ;;  %v680_v48 = vmov 0   ;;  %v43_v49 = vlaneseq  ;;  %vm237_vm1 = vcmask 261120  }
   0xe   :  { %538 = vmatmul.mubr.msk.f32.gmra.mrb[2].mxu0 %vm53_vm0, %v30_v15  ;;  %629 = vmatprep.subr.bf16.mxu1 %v679_v7  ;;  %v213_v21 = vld [vmem:[%s902_s3 + $0x30] sm:$0xff]  ;;  %v32_v23 = vld [vmem:[%s899_s0 + $0x18] sm:$0xff]  ;;  %v215_v25 = vld [vmem:[%s902_s3 + $0x40] sm:$0xff]  ;;  %s681_s19 = smov [#allocation3]  }
   0xf   :  { %154 = vmatprep.mubr.f32.mxu0 %v678_v6  ;;  %598 = vmatpush1.bf16.msra.mxu0 %v597_v16  ;;  %v603_v24 = vpack.c.bf16 %v214_v22, %v213_v21  ;;  %v216_v26 = vld [vmem:[%s902_s3 + $0x48] sm:$0xff]  ;;  %v33_v27 = vld [vmem:[%s899_s0 + $0x20] sm:$0xff]  ;;  %v217_v29 = vld [vmem:[%s902_s3 + $0x50] sm:$0xff]  ;;  %v44_v50 = vshrl.u32 %v43_v49, 7 }
  0x10   :  { %599 = vmatprep.subr.bf16.mxu0 %v679_v7  ;;  %v606_v28 = vpack.c.bf16 %v216_v26, %v215_v25  ;;  %v218_v30 = vld [vmem:[%s902_s3 + $0x58] sm:$0xff]  ;;  %v34_v31 = vld [vmem:[%s899_s0 + $0x28] sm:$0xff]  ;;  %v219_v33 = vld [vmem:[%s902_s3 + $0x60] sm:$0xff]  ;;  %653 = vset.pattern.permute.xlu0 %v680_v48 }
  0x11   :  { %639 = vmatpush1.bf16.msra.mxu1 %v600_v20  ;;  %v609_v32 = vpack.c.bf16 %v218_v30, %v217_v29  ;;  %v220_v34 = vld [vmem:[%s902_s3 + $0x68] sm:$0xff]  ;;  %v35_v35 = vld [vmem:[%s899_s0 + $0x30] sm:$0xff]  ;;  %v222_v38 = vld [vmem:[%s902_s3 + $0x78] sm:$0xff]  ;;  %v45_v51 = vsub.s32 0, %v44_v50  ;;  %v49_v53 = vsub.s32 1, %v44_v50 }
  0x12   :  { %539 = vmatmul.mubr.msk.f32.gmra.mrb[4].mxu0 %vm53_vm0, %v31_v19  ;;  %630 = vmatprep.subr.bf16.mxu1 %v679_v7  ;;  %v612_v36 = vpack.c.bf16 %v220_v34, %v219_v33  ;;  %v221_v37 = vld [vmem:[%s902_s3 + $0x70] sm:$0xff]  ;;  %v36_v39 = vld [vmem:[%s899_s0 + $0x38] sm:$0xff]  ;;  %v223_v41 = vld [vmem:[%s902_s3 + $0x80] sm:$0xff] }
  0x13   :  { %160 = vmatprep.mubr.f32.mxu0 %v678_v6  ;;  %601 = vmatpush1.bf16.msra.mxu0 %v600_v20  ;;  %v615_v40 = vpack.c.bf16 %v222_v38, %v221_v37  ;;  %v224_v42 = vld [vmem:[%s902_s3 + $0x88] sm:$0xff]  ;;  %v225_v44 = vld [vmem:[%s902_s3 + $0x90] sm:$0xff]  ;;  %v226_v45 = vld [vmem:[%s902_s3 + $0x98] sm:$0xff] }
  0x14   :  { %602 = vmatprep.subr.bf16.mxu0 %v679_v7  ;;  %v618_v43 = vpack.c.bf16 %v224_v42, %v223_v41  ;;  %v621_v46 = vpack.c.bf16 %v226_v45, %v225_v44  ;;  %v545_v47 = vld [vmem:[#allocation2] ss:$0 sm:$0xff]  ;;  %v376_v41 = vld [vmem:[%s904_s5 + $0x8] sm:$0xff] }
  0x15   :  { %640 = vmatpush1.bf16.msra.mxu1 %v603_v24  ;;  %234 = vperm.xlu0 %653, %v545_v47   ;;  %v41_v52 = vld [vmem:[%s901_s2] sm:$0x3] }
  0x16   :  { %540 = vmatmul.mubr.msk.f32.gmra.mrb[6].mxu0 %vm53_vm0, %v32_v23  ;;  %631 = vmatprep.subr.bf16.mxu1 %v679_v7  ;;  %v46_v54 = vrot.slane %v41_v52, %v45_v51  ;;  %v50_v55 = vrot.slane %v41_v52, %v49_v53 }
  0x17   :  { %166 = vmatprep.mubr.f32.mxu0 %v678_v6  ;;  %604 = vmatpush1.bf16.msra.mxu0 %v603_v24 }
  0x18   :  { %605 = vmatprep.subr.bf16.mxu0 %v679_v7 }
  0x19   :  { %641 = vmatpush1.bf16.msra.mxu1 %v606_v28 }
  0x1a   :  { %541 = vmatmul.mubr.msk.f32.gmra.mrb[8].mxu0 %vm53_vm0, %v33_v27  ;;  %632 = vmatprep.subr.bf16.mxu1 %v679_v7 }
  0x1b   :  { %172 = vmatprep.mubr.f32.mxu0 %v678_v6  ;;  %607 = vmatpush1.bf16.msra.mxu0 %v606_v28 }
  0x1c   :  { %608 = vmatprep.subr.bf16.mxu0 %v679_v7 }
  0x1d   :  { %642 = vmatpush1.bf16.msra.mxu1 %v609_v32 }
  0x1e   :  { %542 = vmatmul.mubr.msk.f32.gmra.mrb[10].mxu0 %vm53_vm0, %v34_v31  ;;  %633 = vmatprep.subr.bf16.mxu1 %v679_v7 }
  0x1f   :  { %178 = vmatprep.mubr.f32.mxu0 %v678_v6  ;;  %610 = vmatpush1.bf16.msra.mxu0 %v609_v32 }
  0x20   :  { %611 = vmatprep.subr.bf16.mxu0 %v679_v7 }
  0x21   :  { %643 = vmatpush1.bf16.msra.mxu1 %v612_v36 }
  0x22   :  { %543 = vmatmul.mubr.msk.f32.gmra.mrb[12].mxu0 %vm53_vm0, %v35_v35  ;;  %634 = vmatprep.subr.bf16.mxu1 %v679_v7 }
  0x23   :  { %184 = vmatprep.mubr.f32.mxu0 %v678_v6  ;;  %613 = vmatpush1.bf16.msra.mxu0 %v612_v36 }
  0x24   :  { %614 = vmatprep.subr.bf16.mxu0 %v679_v7 }
  0x25   :  { %644 = vmatpush1.bf16.msra.mxu1 %v615_v40 }
  0x26   :  { %544 = vmatmul.mubr.msk.f32.gmra.mrb[14].mxu0 %vm53_vm0, %v36_v39  ;;  %635 = vmatprep.subr.bf16.mxu1 %v679_v7 }
  0x27   :  { %616 = vmatpush1.bf16.msra.mxu0 %v615_v40  ;;  %v375_v40 = vld [vmem:[%s904_s5] sm:$0xff] }
  0x28   :  { %617 = vmatprep.subr.bf16.mxu0 %v679_v7  ;;  %v623_v42 = vpack.c.bf16 %v376_v41, %v375_v40 }
  0x29   :  { %645 = vmatpush1.bf16.msra.mxu1 %v618_v43 }
  0x2a   :  { %636 = vmatprep.subr.bf16.mxu1 %v679_v7 }
  0x2b   :  { %619 = vmatpush1.bf16.msra.mxu0 %v618_v43 }
  0x2c   :  { %620 = vmatprep.subr.bf16.mxu0 %v679_v7 }
  0x2d   :  { %646 = vmatpush1.bf16.msra.mxu1 %v621_v46 }
  0x2f   :  { %622 = vmatpush1.bf16.msra.mxu0 %v621_v46 }
  0x30   :  { %624 = vmatprep.subr.bf16.mxu0 %v623_v42 }
  0x94   :  { %v235_v43 = vpop.permute.xlu0 %234 }
  0xdd   :  { %v144_v56 = vpop.f32.mrb[0].mxu0 }
  0xde   :  { %v145_v57 = vadd.f32 %v144_v56, %v46_v54  ;;  %v146_v58 = vpop.f32.mrb[1].mxu0 }
  0xdf   :  { %v147_v59 = vadd.f32 %v146_v58, %v50_v55 }
  0xe0   :  { %v191_v62 = vmax.f32 %v145_v57, 0.0 }
  0xe1   :  { %v192_v60 = vmax.f32 %v147_v59, 0.0  ;;  %v150_v61 = vpop.f32.mrb[2].mxu0 }
  0xe2   :  { %v151_v63 = vadd.f32 %v150_v61, %v46_v54  ;;  %v152_v0 = vpop.f32.mrb[3].mxu0 }
  0xe3   :  { %v153_v1 = vadd.f32 %v152_v0, %v50_v55  ;;  %546 = vmatprep.mubr.msk.f32.mxu0 %vm237_vm1, %v192_v60 }
  0xe4   :  { %327 = vmatmul.mubr.f32.vlgmr.msra.gmra.mrb[16].mxu0 %v191_v62  ;;  %v193_v4 = vmax.f32 %v151_v63, 0.0 }
  0xe5   :  { %v194_v2 = vmax.f32 %v153_v1, 0.0  ;;  %v156_v3 = vpop.f32.mrb[4].mxu0  ;;  %626 = vmatpush3.bf16.msra.mxu0 %v623_v42 }
  0xe6   :  { %v157_v5 = vadd.f32 %v156_v3, %v46_v54  ;;  %v158_v6 = vpop.f32.mrb[5].mxu0 }
  0xe7   :  { %v159_v7 = vadd.f32 %v158_v6, %v50_v55  ;;  %547 = vmatprep.mubr.msk.f32.mxu1 %vm237_vm1, %v194_v2 }
  0xe8   :  { %332 = vmatmul.mubr.f32.vlgmr.msra.gmra.mrb[0].mxu1 %v193_v4  ;;  %v195_v10 = vmax.f32 %v157_v5, 0.0 }
  0xe9   :  { %v196_v8 = vmax.f32 %v159_v7, 0.0  ;;  %v162_v9 = vpop.f32.mrb[6].mxu0 }
  0xea   :  { %v163_v11 = vadd.f32 %v162_v9, %v46_v54  ;;  %v164_v12 = vpop.f32.mrb[7].mxu0 }
  0xeb   :  { %v165_v13 = vadd.f32 %v164_v12, %v50_v55  ;;  %548 = vmatprep.mubr.msk.f32.mxu1 %vm237_vm1, %v196_v8  ;;  %v554_v12 = vld [vmem:[%s905_s6] ss:$0 sm:$0xff]  ;;  %s526_s6 = sshll.u32 %s681_s19, 4  ;;  %s527_s6 = int_to_ptr.vmem [resolvable:$true] %s526_s6 }
  0xec   :  { %337 = vmatmul.mubr.f32.gmra.mrb[2].mxu1 %v195_v10  ;;  %v197_v16 = vmax.f32 %v163_v11, 0.0  ;;  %s654_s20 = scalar_lea.vmem %s527_s6, 1024  ;;  %p659_p1 = scmp.lt.s32.totalorder %s527_s6, %s527_s6 }
  0xed   :  { %v198_v14 = vmax.f32 %v165_v13, 0.0  ;;  %v168_v15 = vpop.f32.mrb[8].mxu0  ;;  %p655_p0 = scmp.ne.s32.totalorder %s527_s6, %s654_s20  ;;  %p660_p2 = scmp.lt.s32.totalorder %s654_s20, %s654_s20 }
  0xee   :  { %v169_v17 = vadd.f32 %v168_v15, %v46_v54  ;;  %v170_v18 = vpop.f32.mrb[9].mxu0 }
  0xef   :  { %v171_v19 = vadd.f32 %v170_v18, %v50_v55  ;;  %549 = vmatprep.mubr.msk.f32.mxu1 %vm237_vm1, %v198_v14  ;;  %p661_p3 = por %p660_p2, %p659_p1 }
  0xf0   :  { %342 = vmatmul.mubr.f32.gmra.mrb[4].mxu1 %v197_v16  ;;  %v199_v22 = vmax.f32 %v169_v17, 0.0 }
  0xf1   :  { %v200_v20 = vmax.f32 %v171_v19, 0.0  ;;  %v174_v21 = vpop.f32.mrb[10].mxu0  ;;  %p662_p4 = pnand %p661_p3, %p655_p0 }
  0xf2   :  { %v175_v23 = vadd.f32 %v174_v21, %v46_v54  ;;  %v176_v24 = vpop.f32.mrb[11].mxu0 }
  0xf3   :  { %v177_v25 = vadd.f32 %v176_v24, %v50_v55  ;;  %550 = vmatprep.mubr.msk.f32.mxu1 %vm237_vm1, %v200_v20 }
  0xf4   :  { %347 = vmatmul.mubr.f32.gmra.mrb[6].mxu1 %v199_v22  ;;  %v201_v28 = vmax.f32 %v175_v23, 0.0 }
  0xf5   :  { %v202_v26 = vmax.f32 %v177_v25, 0.0  ;;  %v180_v27 = vpop.f32.mrb[12].mxu0 }
  0xf6   :  { %v181_v29 = vadd.f32 %v180_v27, %v46_v54  ;;  %v182_v30 = vpop.f32.mrb[13].mxu0 }
  0xf7   :  { %v183_v31 = vadd.f32 %v182_v30, %v50_v55  ;;  %551 = vmatprep.mubr.msk.f32.mxu1 %vm237_vm1, %v202_v26 }
  0xf8   :  { %352 = vmatmul.mubr.f32.gmra.mrb[8].mxu1 %v201_v28  ;;  %v203_v34 = vmax.f32 %v181_v29, 0.0 }
  0xf9   :  { %v204_v32 = vmax.f32 %v183_v31, 0.0  ;;  %v186_v33 = vpop.f32.mrb[14].mxu0 }
  0xfa   :  { %v187_v35 = vadd.f32 %v186_v33, %v46_v54  ;;  %v188_v36 = vpop.f32.mrb[15].mxu0 }
  0xfb   :  { %v189_v37 = vadd.f32 %v188_v36, %v50_v55  ;;  %552 = vmatprep.mubr.msk.f32.mxu1 %vm237_vm1, %v204_v32 }
  0xfc   :  { %357 = vmatmul.mubr.f32.gmra.mrb[10].mxu1 %v203_v34  ;;  %v205_v39 = vmax.f32 %v187_v35, 0.0 }
  0xfd   :  { %v206_v38 = vmax.f32 %v189_v37, 0.0 }
  0xff   :  { %553 = vmatprep.mubr.msk.f32.mxu1 %vm237_vm1, %v206_v38 }
 0x100   :  { %362 = vmatmul.mubr.f32.gmra.mrb[12].mxu1 %v205_v39 }
 0x1b7   :  { %v328_v44 = vpop.f32.mrb[16].mxu0 }
 0x1b8   :  { %v329_v45 = vadd.f32 %v328_v44, %v235_v43  ;;  %v330_v46 = vpop.f32.mrb[17].mxu0 }
 0x1ba   :  { %v367_v47 = vmax.f32 %v329_v45, 0.0 }
 0x1bb   :  { %v333_v48 = vpop.f32.mrb[0].mxu1 }
 0x1bc   :  { %v334_v49 = vadd.f32 %v333_v48, %v235_v43  ;;  %v335_v50 = vpop.f32.mrb[1].mxu1  ;;  %577 = vmatprep.mubr.msk.f32.mxu0 %vm53_vm0, %v367_v47 }
 0x1be   :  { %v368_v51 = vmax.f32 %v334_v49, 0.0 }
 0x1bf   :  { %v338_v52 = vpop.f32.mrb[2].mxu1 }
 0x1c0   :  { %v339_v53 = vadd.f32 %v338_v52, %v235_v43  ;;  %v340_v54 = vpop.f32.mrb[3].mxu1  ;;  %578 = vmatmul.mubr.msk.f32.vlgmr.msra.gmra.mrb[18].mxu0 %vm53_vm0, %v368_v51 }
 0x1c2   :  { %v369_v55 = vmax.f32 %v339_v53, 0.0 }
 0x1c3   :  { %v343_v56 = vpop.f32.mrb[4].mxu1 }
 0x1c4   :  { %v344_v57 = vadd.f32 %v343_v56, %v235_v43  ;;  %v345_v58 = vpop.f32.mrb[5].mxu1  ;;  %580 = vmatprep.mubr.msk.f32.mxu0 %vm53_vm0, %v369_v55 }
 0x1c6   :  { %v370_v59 = vmax.f32 %v344_v57, 0.0 }
 0x1c7   :  { %v348_v60 = vpop.f32.mrb[6].mxu1 }
 0x1c8   :  { %v349_v61 = vadd.f32 %v348_v60, %v235_v43  ;;  %v350_v62 = vpop.f32.mrb[7].mxu1  ;;  %581 = vmatmul.mubr.msk.f32.gmra.mrb[20].mxu0 %vm53_vm0, %v370_v59 }
 0x1ca   :  { %v371_v63 = vmax.f32 %v349_v61, 0.0 }
 0x1cb   :  { %v353_v0 = vpop.f32.mrb[8].mxu1 }
 0x1cc   :  { %v354_v1 = vadd.f32 %v353_v0, %v235_v43  ;;  %v355_v2 = vpop.f32.mrb[9].mxu1  ;;  %583 = vmatprep.mubr.msk.f32.mxu0 %vm53_vm0, %v371_v63 }
 0x1ce   :  { %v372_v3 = vmax.f32 %v354_v1, 0.0 }
 0x1cf   :  { %v358_v4 = vpop.f32.mrb[10].mxu1 }
 0x1d0   :  { %v359_v5 = vadd.f32 %v358_v4, %v235_v43  ;;  %v360_v6 = vpop.f32.mrb[11].mxu1  ;;  %584 = vmatmul.mubr.msk.f32.gmra.mrb[22].mxu0 %vm53_vm0, %v372_v3 }
 0x1d2   :  { %v373_v7 = vmax.f32 %v359_v5, 0.0 }
 0x1d3   :  { %v363_v8 = vpop.f32.mrb[12].mxu1 }
 0x1d4   :  { %v364_v9 = vadd.f32 %v363_v8, %v235_v43  ;;  %v365_v10 = vpop.f32.mrb[13].mxu1  ;;  %586 = vmatprep.mubr.msk.f32.mxu0 %vm53_vm0, %v373_v7 }
 0x1d6   :  { %v374_v11 = vmax.f32 %v364_v9, 0.0 }
 0x1d8   :  { %587 = vmatmul.mubr.msk.f32.gmra.mrb[24].mxu0 %vm53_vm0, %v374_v11 }
 0x293   :  { %v579_v13 = vpop.f32.mrb[18].mxu0 }
 0x294   :  { %v480_v14 = vadd.f32 %v579_v13, %v554_v12  ;;  %v474_v15 = vpop.f32.mrb[19].mxu0 }
 0x295   :  { %v475_v16 = vadd.f32 %v554_v12, %v474_v15 }
 0x296   :  { %514 = vst [vmem:[#allocation3 + $0x8] sm:$0xff] %v480_v14 }
 0x297   :  { %513 = vst [vmem:[#allocation3] sm:$0xff] %v475_v16 }
 0x29b   :  { %v582_v17 = vpop.f32.mrb[20].mxu0 }
 0x29c   :  { %v490_v18 = vadd.f32 %v582_v17, %v554_v12  ;;  %v484_v19 = vpop.f32.mrb[21].mxu0 }
 0x29d   :  { %v485_v20 = vadd.f32 %v554_v12, %v484_v19 }
 0x29e   :  { %516 = vst [vmem:[#allocation3 + $0x18] sm:$0xff] %v490_v18 }
 0x29f   :  { %515 = vst [vmem:[#allocation3 + $0x10] sm:$0xff] %v485_v20 }
 0x2a3   :  { %v585_v21 = vpop.f32.mrb[22].mxu0 }
 0x2a4   :  { %v500_v22 = vadd.f32 %v585_v21, %v554_v12  ;;  %v494_v23 = vpop.f32.mrb[23].mxu0 }
 0x2a5   :  { %v495_v24 = vadd.f32 %v554_v12, %v494_v23 }
 0x2a6   :  { %518 = vst [vmem:[#allocation3 + $0x28] sm:$0xff] %v500_v22 }
 0x2a7   :  { %517 = vst [vmem:[#allocation3 + $0x20] sm:$0xff] %v495_v24 }
 0x2ab   :  { %v588_v25 = vpop.f32.mrb[24].mxu0 }
 0x2ac   :  { %v510_v26 = vadd.f32 %v588_v25, %v554_v12  ;;  %v504_v27 = vpop.f32.mrb[25].mxu0 }
 0x2ad   :  { %v505_v28 = vadd.f32 %v554_v12, %v504_v27 }
 0x2ae   :  { %520 = vst [vmem:[#allocation3 + $0x38] sm:$0xff] %v510_v26 }
 0x2af   :  { %519 = vst [vmem:[#allocation3 + $0x30] sm:$0xff] %v505_v28 }
 0x2b0   :  { %665 = shalt.err (!%p662_p4)
}
 0x2b1   :  { %s666_s23 = scalar_lea.hbm %s906_s7, 1024 }
 0x2b2   :  { %p667_p5 = scmp.ne.s32.totalorder %s906_s7, %s666_s23  ;;  %p670_p6 = scmp.lt.u32.totalorder %s666_s23, %s906_s7 }
 0x2b4   :  { %p672_p7 = pnand %p670_p6, %p667_p5 }
 0x2b6   :  { %675 = shalt.err (!%p672_p7)
}
 0x2b7   :  { %s682_s28 = smov 128   ;;  %s683_s29 = smov 8  }
 0x2b8   :  { %532 = dma.vmem_to_hbm [thread:$0]  %s527_s6, 1024, %s906_s7, [#allocation4], %s682_s28, %s682_s28, %s683_s29  }
 0x2b9   :  { %676 = dma.done.wait [#allocation4], 1024  }
 0x2ba   :  { %677 = vsyncadd [#allocation4], 4294966272 }
 0x2bb   :  { %536 = vsyncpa [#allocation4], 1 }

</bundles_post_ra>
